<compile_context>
chip_gen: v7x
topology: tpu7x:2x2x1
jax: 0.10.0
libtpu: 0.0.40
codegen_flags: <defaults>
</compile_context>

<pallas_src>
import functools

import jax
import jax.numpy as jnp
from jax.experimental import pallas as pl
from jax.experimental.pallas import tpu as pltpu

EPS = 1e-5
LANE = 128
SUBLANE = 8


def _round_up(v, m):
    return (v + m - 1) // m * m


def _predictor_kernel(x_ref, p_ref, out_ref, *, feat, width, w1_row0, w2_row0):
    # x: (N, F) f32, full batch in one block (BN stats need the whole batch).
    x = x_ref[...]
    n = x.shape[0]
    inv_n = 1.0 / n

    # ---- BatchNorm1d (training-mode batch stats, biased variance) ----
    # gamma/beta already folded into W1'/b1' on the host -> only normalize.
    mean = jnp.sum(x, axis=0, keepdims=True) * inv_n            # (1, F)
    centered = x - mean                                          # (N, F)
    var = jnp.sum(centered * centered, axis=0, keepdims=True) * inv_n
    xn = centered * jax.lax.rsqrt(var + EPS)                     # (N, F)

    # ---- Unpack parameters (static, sublane-aligned slices) ----
    # row 0: b1' (first H lanes), row 1: b2 (first O lanes),
    # rows [w1_row0, w1_row0+F): W1' (F, W), rows [w2_row0, w2_row0+W): W2 (W, W).
    b1 = p_ref[0:1, :]                                           # (1, W)
    b2 = p_ref[1:2, :]                                           # (1, W)
    w1 = p_ref[w1_row0:w1_row0 + feat, :]                        # (F, W)
    w2 = p_ref[w2_row0:w2_row0 + width, :]                       # (W, W)

    # ---- MLP: Linear -> ReLU -> Linear, all lane-dense (128-wide) ----
    h = jnp.dot(xn, w1, preferred_element_type=jnp.float32) + b1  # (N, W)
    h = jnp.maximum(h, 0.0)
    o = jnp.dot(h, w2, preferred_element_type=jnp.float32) + b2   # (N, W)

    out_ref[...] = o.astype(out_ref.dtype)


def predictor_model_forward(x, params):
    """Returns dict(prediction=...), mirroring PredictorModel.forward."""
    gamma, beta = params["gamma"], params["beta"]
    w1, b1 = params["w1"], params["b1"]
    w2, b2 = params["w2"], params["b2"]

    N, F = x.shape
    H = w1.shape[1]
    O = w2.shape[1]

    # Shared lane-dense width for hidden and output, sublane-aligned F block.
    W = max(_round_up(H, LANE), _round_up(O, LANE))
    Fp = _round_up(F, SUBLANE)

    f32 = jnp.float32

    # ---- Fold the BatchNorm affine into the first Linear (host side) ----
    #   (xn * gamma + beta) @ W1 + b1  ==  xn @ (gamma.T * W1) + (beta @ W1 + b1)
    w1f = (w1 * gamma.reshape(F, 1)).astype(f32)                 # (F, H)
    b1f = (beta @ w1 + b1).astype(f32)                           # (1, H)

    # ---- Pack all params into ONE lane-dense buffer (single input DMA) ----
    rows = SUBLANE + Fp + W
    packed = jnp.zeros((rows, W), f32)
    packed = packed.at[0, :H].set(b1f.reshape(H))
    packed = packed.at[1, :O].set(b2.astype(f32).reshape(O))
    packed = packed.at[SUBLANE:SUBLANE + F, :H].set(w1f)
    packed = packed.at[SUBLANE + Fp:SUBLANE + Fp + H, :O].set(w2.astype(f32))

    kernel = functools.partial(
        _predictor_kernel,
        feat=F, width=W, w1_row0=SUBLANE, w2_row0=SUBLANE + Fp)

    vmem = pl.BlockSpec(memory_space=pltpu.MemorySpace.VMEM)

    out_padded = pl.pallas_call(
        kernel,
        out_shape=jax.ShapeDtypeStruct((N, W), f32),
        in_specs=[vmem, vmem],
        out_specs=vmem,
    )(x.astype(f32), packed)

    # Lane-dense kernel output; real prediction is the first O columns.
    return dict(prediction=out_padded[:, :O])


def init_params(key, in_dim, hidden_dim, out_dim):
    k1, k2, k3, k4, k5 = jax.random.split(key, 5)
    # BatchNorm1d affine params (PyTorch init: gamma=1, beta=0); perturb both
    # deterministically so the affine fold is actually exercised.
    gamma = jnp.ones((1, in_dim), jnp.float32) + 0.01 * jax.random.normal(k1, (1, in_dim))
    beta = 0.01 * jax.random.normal(k5, (1, in_dim), jnp.float32)
    # Linear layers, stored as (in, out) so the kernel computes x @ W.
    w1 = 0.1 * jax.random.normal(k2, (in_dim, hidden_dim), jnp.float32)
    b1 = 0.01 * jax.random.normal(k3, (1, hidden_dim), jnp.float32)
    w2 = 0.1 * jax.random.normal(k4, (hidden_dim, out_dim), jnp.float32)
    b2 = jnp.zeros((1, out_dim), jnp.float32)
    return dict(gamma=gamma, beta=beta, w1=w1, b1=b1, w2=w2, b2=b2)


if __name__ == "__main__":
    # predictor.layers = [32, 64, 16]  ->  BatchNorm1d(32) then MLP 32->64->16
    N, F, H, O = 8, 32, 64, 16

    key = jax.random.PRNGKey(0)
    kx, kp = jax.random.split(key)
    x = jax.random.normal(kx, (N, F), jnp.float32)
    params = init_params(kp, F, H, O)

    out = predictor_model_forward(x, params)
    pred = jax.block_until_ready(out["prediction"])

    # Reference check in plain JAX (original, un-folded math).
    mean = jnp.mean(x, axis=0, keepdims=True)
    var = jnp.mean((x - mean) ** 2, axis=0, keepdims=True)
    y = (x - mean) / jnp.sqrt(var + EPS) * params["gamma"] + params["beta"]
    h = jnp.maximum(y @ params["w1"] + params["b1"], 0.0)
    ref = h @ params["w2"] + params["b2"]

    assert pred.shape == (N, O)
    assert jnp.allclose(pred, ref, atol=1e-4, rtol=1e-4)

    print("KERNEL_OK")
</pallas_src>

<mosaic_0001>
module attributes {stable_mosaic.version = 11 : i64} {
  func.func @_predictor_kernel(%arg0: memref<8x32xf32, #tpu.memory_space<vmem>>, %arg1: memref<168x128xf32, #tpu.memory_space<vmem>>, %arg2: memref<8x128xf32, #tpu.memory_space<vmem>>) attributes {dimension_semantics = [], scalar_prefetch = 0 : i64, scratch_operands = 0 : i64, tpu.core_type = #tpu.core_type<tc>} {
    %c0 = arith.constant 0 : index
    %c0_0 = arith.constant 0 : index
    %0 = vector.load %arg0[%c0, %c0_0] : memref<8x32xf32, #tpu.memory_space<vmem>>, vector<8x32xf32>
    %cst = arith.constant dense<0.000000e+00> : vector<32xf32>
    %1 = vector.multi_reduction <add>, %0, %cst [0] : vector<8x32xf32> to vector<32xf32>
    %2 = vector.shape_cast %1 : vector<32xf32> to vector<1x32xf32>
    %cst_1 = arith.constant 1.250000e-01 : f32
    %3 = vector.broadcast %cst_1 : f32 to vector<1x32xf32>
    %4 = arith.mulf %2, %3 : vector<1x32xf32>
    %5 = vector.broadcast %4 : vector<1x32xf32> to vector<8x32xf32>
    %6 = arith.subf %0, %5 : vector<8x32xf32>
    %7 = arith.mulf %6, %6 : vector<8x32xf32>
    %cst_2 = arith.constant dense<0.000000e+00> : vector<32xf32>
    %8 = vector.multi_reduction <add>, %7, %cst_2 [0] : vector<8x32xf32> to vector<32xf32>
    %9 = vector.shape_cast %8 : vector<32xf32> to vector<1x32xf32>
    %cst_3 = arith.constant 1.250000e-01 : f32
    %10 = vector.broadcast %cst_3 : f32 to vector<1x32xf32>
    %11 = arith.mulf %9, %10 : vector<1x32xf32>
    %cst_4 = arith.constant 9.99999974E-6 : f32
    %12 = vector.broadcast %cst_4 : f32 to vector<1x32xf32>
    %13 = arith.addf %11, %12 : vector<1x32xf32>
    %14 = math.rsqrt %13 : vector<1x32xf32>
    %15 = vector.broadcast %14 : vector<1x32xf32> to vector<8x32xf32>
    %16 = arith.mulf %6, %15 : vector<8x32xf32>
    %c0_5 = arith.constant 0 : index
    %c0_6 = arith.constant 0 : index
    %17 = vector.load %arg1[%c0_5, %c0_6] : memref<168x128xf32, #tpu.memory_space<vmem>>, vector<1x128xf32>
    %c1 = arith.constant 1 : index
    %c0_7 = arith.constant 0 : index
    %18 = vector.load %arg1[%c1, %c0_7] : memref<168x128xf32, #tpu.memory_space<vmem>>, vector<1x128xf32>
    %c8 = arith.constant 8 : index
    %c0_8 = arith.constant 0 : index
    %19 = vector.load %arg1[%c8, %c0_8] : memref<168x128xf32, #tpu.memory_space<vmem>>, vector<32x128xf32>
    %c40 = arith.constant 40 : index
    %c0_9 = arith.constant 0 : index
    %20 = vector.load %arg1[%c40, %c0_9] : memref<168x128xf32, #tpu.memory_space<vmem>>, vector<128x128xf32>
    %cst_10 = arith.constant dense<0.000000e+00> : vector<8x128xf32>
    %21 = tpu.matmul %16, %19, %cst_10 {dimension_numbers = #tpu.dot_dimension_numbers<[1], [0], [0], [1], [0, 0, 1, 1], [], []>} : vector<8x32xf32>, vector<32x128xf32>, vector<8x128xf32> -> vector<8x128xf32>
    %22 = vector.broadcast %17 : vector<1x128xf32> to vector<8x128xf32>
    %23 = arith.addf %21, %22 : vector<8x128xf32>
    %cst_11 = arith.constant 0.000000e+00 : f32
    %24 = vector.broadcast %cst_11 : f32 to vector<8x128xf32>
    %25 = arith.maximumf %23, %24 : vector<8x128xf32>
    %cst_12 = arith.constant dense<0.000000e+00> : vector<8x128xf32>
    %26 = tpu.matmul %25, %20, %cst_12 {dimension_numbers = #tpu.dot_dimension_numbers<[1], [0], [0], [1], [0, 0, 1, 1], [], []>} : vector<8x128xf32>, vector<128x128xf32>, vector<8x128xf32> -> vector<8x128xf32>
    %27 = vector.broadcast %18 : vector<1x128xf32> to vector<8x128xf32>
    %28 = arith.addf %26, %27 : vector<8x128xf32>
    %c0_13 = arith.constant 0 : index
    %c0_14 = arith.constant 0 : index
    %29 = vector.load %arg2[%c0_13, %c0_14] : memref<8x128xf32, #tpu.memory_space<vmem>>, vector<8x128xf32>
    tpu.vector_store %arg2[%c0_13, %c0_14], %28 {strides = array<i32>} : memref<8x128xf32, #tpu.memory_space<vmem>>, vector<8x128xf32>,
    return
  }
}

</mosaic_0001>

<bundles_post_ra>
// kernel: tpu_custom_call.1
= control target key start
LH: loop header
LB: loop body
LE: loop exit
PB: predicated region body
PF: predicated region fallthrough
CT: control target
= control target key end

     0   :  { %7 = vsyncpa [#allocation3], 0  ;;  %s514_s0 = inlined_call_operand.hbm [shape: f32[8,32], index: 0, kind: input, shape index: {}]   ;;  %s515_s1 = inlined_call_operand.hbm [shape: f32[168,128], index: 1, kind: input, shape index: {}]   ;;  %s516_s2 = inlined_call_operand.hbm [shape: f32[8,128], index: 2, kind: output, shape index: {}]  }
   0x1   :  { %8 = vsyncpa [#allocation6], 0 }
   0x2   :  { %9 = vsyncpa [#allocation4], 0  ;;  %s435_s9 = smov [#allocation2]   ;;  %s436_s11 = smov [#allocation5]  }
   0x3   :  { %s16_s10 = sshll.u32 %s435_s9, 4  ;;  %s25_s12 = sshll.u32 %s436_s11, 4  ;;  %s17_s10 = int_to_ptr.vmem [resolvable:$true] %s16_s10  ;;  %s458_s12 = int_to_ptr.vmem [resolvable:$true] %s25_s12 }
   0x4   :  { %s363_s15 = scalar_lea.hbm %s514_s0, 128 }
   0x5   :  { %p364_p0 = scmp.ne.s32.totalorder %s514_s0, %s363_s15  ;;  %p367_p1 = scmp.lt.u32.totalorder %s363_s15, %s514_s0 }
   0x7   :  { %p369_p2 = pnand %p367_p1, %p364_p0 }
   0x9   :  { %372 = shalt.err (!%p369_p2)
}
   0xa   :  { %s373_s20 = scalar_lea.vmem %s17_s10, 128  ;;  %p378_p4 = scmp.lt.s32.totalorder %s17_s10, %s17_s10 }
   0xb   :  { %p374_p3 = scmp.ne.s32.totalorder %s17_s10, %s373_s20  ;;  %p379_p5 = scmp.lt.s32.totalorder %s373_s20, %s373_s20 }
   0xd   :  { %p380_p6 = por %p379_p5, %p378_p4 }
   0xf   :  { %p381_p7 = pnand %p380_p6, %p374_p3 }
  0x11   :  { %384 = shalt.err (!%p381_p7)
}
  0x12   :  { %19 = dma.hbm_to_vmem [thread:$0]  %s514_s0, 128, %s17_s10, [#allocation3]  }
  0x13   :  { %s385_s25 = scalar_lea.hbm %s515_s1, 2688 }
  0x14   :  { %p386_p8 = scmp.ne.s32.totalorder %s515_s1, %s385_s25  ;;  %p389_p9 = scmp.lt.u32.totalorder %s385_s25, %s515_s1 }
  0x16   :  { %p391_p10 = pnand %p389_p9, %p386_p8 }
  0x18   :  { %394 = shalt.err (!%p391_p10)
}
  0x19   :  { %s395_s30 = scalar_lea.vmem %s458_s12, 2688  ;;  %p400_p12 = scmp.lt.s32.totalorder %s458_s12, %s458_s12 }
  0x1a   :  { %p396_p11 = scmp.ne.s32.totalorder %s458_s12, %s395_s30  ;;  %p401_p13 = scmp.lt.s32.totalorder %s395_s30, %s395_s30 }
  0x1c   :  { %p402_p0 = por %p401_p13, %p400_p12 }
  0x1e   :  { %p403_p1 = pnand %p402_p0, %p396_p11 }
  0x20   :  { %406 = shalt.err (!%p403_p1)
}
  0x21   :  { %s437_s0 = smov 128   ;;  %s438_s3 = smov 8  }
  0x22   :  { %31 = dma.hbm_to_vmem [thread:$0]  %s515_s1, 2688, %s458_s12, [#allocation6], %s437_s0, %s437_s0, %s438_s3  }
  0x23   :  { %429 = dma.done.wait [#allocation3], 128  }
  0x24   :  { %430 = vsyncadd [#allocation3], 4294967168 }
  0x25   :  { %431 = dma.done.wait [#allocation6], 2688  }
  0x26   :  { %432 = vsyncadd [#allocation6], 4294964608  ;;  %v439_v0 = vmov 0.0|0.0   ;;  %vm440_vm0 = vmmov 0   ;;  %v441_v1 = vmov 0.0   ;;  %vm39_vm1 = vcmask 261120  }
  0x27   :  { %323 = vmatprep.subr.bf16.mxu0 %v439_v0  ;;  %285 = vmatprep.mubr.msk.f32.mxu0 %vm440_vm0, %v441_v1  ;;  %v63_v2 = vld [vmem:[#allocation5 + $0x8] sm:$0xff]  ;;  %v64_v3 = vld [vmem:[#allocation5 + $0x10] sm:$0xff]  ;;  %v65_v4 = vld [vmem:[#allocation5 + $0x18] sm:$0xff]  ;;  %s442_s1 = smov [#allocation7]  }
  0x28   :  { %329 = vmatprep.subr.bf16.mxu1 %v439_v0  ;;  %320 = vmatprep.mubr.msk.f32.mxu1 %vm440_vm0, %v441_v1  ;;  %v324_v5 = vpack.c.bf16 %v64_v3, %v63_v2  ;;  %v66_v6 = vld [vmem:[#allocation5 + $0x20] sm:$0xff]  ;;  %v38_v7 = vld [vmem:[#allocation2] sm:$0xff]  ;;  %v67_v8 = vld [vmem:[#allocation5 + $0x28] sm:$0xff]  ;;  %s242_s6 = sshll.u32 %s442_s1, 4  ;;  %s243_s6 = int_to_ptr.vmem [resolvable:$true] %s242_s6 }
  0x29   :  { %v40_v9 = vsel %vm39_vm1, %v38_v7, 0.0  ;;  %v68_v10 = vld [vmem:[#allocation5 + $0x30] sm:$0xff]  ;;  %v69_v11 = vld [vmem:[#allocation5 + $0x38] sm:$0xff]  ;;  %v70_v12 = vld [vmem:[#allocation5 + $0x40] sm:$0xff]  ;;  %v327_v13 = vpack.c.bf16 %v66_v6, %v65_v4  ;;  %s407_s7 = scalar_lea.vmem %s243_s6, 128  ;;  %p412_p3 = scmp.lt.s32.totalorder %s243_s6, %s243_s6 }
  0x2a   :  { %325 = vmatpush3.bf16.msra.mxu0 %v324_v5  ;;  %v41_v14 = vrot.slane %v40_v9, 4  ;;  %v330_v15 = vpack.c.bf16 %v68_v10, %v67_v8  ;;  %v333_v17 = vpack.c.bf16 %v70_v12, %v69_v11  ;;  %v71_v18 = vld [vmem:[#allocation5 + $0x48] sm:$0xff]  ;;  %v72_v19 = vld [vmem:[#allocation5 + $0x50] sm:$0xff]  ;;  %v73_v23 = vld [vmem:[#allocation5 + $0x58] sm:$0xff]  ;;  %p408_p2 = scmp.ne.s32.totalorder %s243_s6, %s407_s7  ;;  %p413_p4 = scmp.lt.s32.totalorder %s407_s7, %s407_s7 }
  0x2b   :  { %326 = vmatprep.subr.bf16.mxu0 %v439_v0  ;;  %v336_v22 = vpack.c.bf16 %v72_v19, %v71_v18  ;;  %v74_v24 = vld [vmem:[#allocation5 + $0x60] sm:$0xff]  ;;  %v75_v28 = vld [vmem:[#allocation5 + $0x68] sm:$0xff]  ;;  %v76_v29 = vld [vmem:[#allocation5 + $0x70] sm:$0xff] }
  0x2c   :  { %v42_v16 = vadd.f32 %v41_v14, %v40_v9  ;;  %331 = vmatpush3.bf16.msra.mxu1 %v330_v15  ;;  %v339_v27 = vpack.c.bf16 %v74_v24, %v73_v23  ;;  %v342_v32 = vpack.c.bf16 %v76_v29, %v75_v28  ;;  %v77_v33 = vld [vmem:[#allocation5 + $0x78] sm:$0xff]  ;;  %v78_v34 = vld [vmem:[#allocation5 + $0x80] sm:$0xff]  ;;  %v79_v39 = vld [vmem:[#allocation5 + $0x88] sm:$0xff]  ;;  %p414_p5 = por %p413_p4, %p412_p3 }
  0x2d   :  { %332 = vmatprep.subr.bf16.mxu1 %v439_v0  ;;  %v345_v37 = vpack.c.bf16 %v78_v34, %v77_v33  ;;  %v80_v40 = vld [vmem:[#allocation5 + $0x90] sm:$0xff]  ;;  %v81_v51 = vld [vmem:[#allocation5 + $0x98] sm:$0xff]  ;;  %v82_v52 = vld [vmem:[#allocation5 + $0xa0] sm:$0xff] }
  0x2e   :  { %328 = vmatpush3.bf16.msra.mxu0 %v327_v13  ;;  %v43_v20 = vrot.slane %v42_v16, 2  ;;  %v348_v42 = vpack.c.bf16 %v80_v40, %v79_v39  ;;  %v351_v53 = vpack.c.bf16 %v82_v52, %v81_v51  ;;  %v252_v54 = vld [vmem:[#allocation5] ss:$0 sm:$0xff]  ;;  %v254_v59 = vld [vmem:[#allocation5 + $0x1] ss:$0 sm:$0xff]  ;;  %p415_p6 = pnand %p414_p5, %p408_p2 }
  0x30   :  { %v44_v21 = vadd.f32 %v43_v20, %v42_v16  ;;  %334 = vmatpush3.bf16.msra.mxu1 %v333_v17 }
  0x31   :  { %335 = vmatprep.subr.bf16.mxu1 %v439_v0 }
  0x32   :  { %v45_v25 = vrot.slane %v44_v21, 1 }
  0x34   :  { %v46_v26 = vadd.f32 %v45_v25, %v44_v21  ;;  %337 = vmatpush3.bf16.msra.mxu1 %v336_v22 }
  0x35   :  { %338 = vmatprep.subr.bf16.mxu1 %v439_v0 }
  0x36   :  { %v47_v30 = vmul.f32 0.125, %v46_v26 }
  0x38   :  { %v48_v31 = vsub.f32 %v38_v7, %v47_v30  ;;  %340 = vmatpush3.bf16.msra.mxu1 %v339_v27 }
  0x39   :  { %341 = vmatprep.subr.bf16.mxu1 %v439_v0 }
  0x3a   :  { %v49_v35 = vmul.f32 %v48_v31, %v48_v31 }
  0x3c   :  { %v50_v36 = vsel %vm39_vm1, %v49_v35, 0.0  ;;  %343 = vmatpush3.bf16.msra.mxu1 %v342_v32 }
  0x3d   :  { %v51_v38 = vrot.slane %v50_v36, 4  ;;  %344 = vmatprep.subr.bf16.mxu1 %v439_v0 }
  0x3f   :  { %v52_v41 = vadd.f32 %v51_v38, %v50_v36 }
  0x40   :  { %346 = vmatpush3.bf16.msra.mxu1 %v345_v37 }
  0x41   :  { %v53_v43 = vrot.slane %v52_v41, 2  ;;  %347 = vmatprep.subr.bf16.mxu1 %v439_v0 }
  0x43   :  { %v54_v44 = vadd.f32 %v53_v43, %v52_v41 }
  0x44   :  { %349 = vmatpush3.bf16.msra.mxu1 %v348_v42 }
  0x45   :  { %v55_v45 = vrot.slane %v54_v44, 1  ;;  %350 = vmatprep.subr.bf16.mxu1 %v439_v0 }
  0x47   :  { %v56_v46 = vadd.f32 %v55_v45, %v54_v44 }
  0x48   :  { %352 = vmatpush3.bf16.msra.mxu1 %v351_v53 }
  0x49   :  { %v57_v47 = vmul.f32 0.125, %v56_v46 }
  0x4b   :  { %v58_v48 = vadd.f32 1e-05, %v57_v47 }
  0x4d   :  { %361 = vrsqrt.f32 %v58_v48 }
  0x57   :  { %v362_v49 = vpop.eup %361 }
  0x58   :  { %v60_v50 = vmul.f32 %v362_v49, %v48_v31 }
  0x5a   :  { %286 = vmatmul.mubr.msk.f32.vlgmr.msra.gmra.mrb[0].mxu0 %vm39_vm1, %v60_v50 }
 0x12d   :  { %v156_v55 = vpop.f32.mrb[0].mxu0 }
 0x12e   :  { %v157_v56 = vadd.f32 %v252_v54, %v156_v55  ;;  %v287_v57 = vpop.f32.mrb[1].mxu0 }
 0x130   :  { %v160_v58 = vmax.f32 %v157_v56, 0.0 }
 0x132   :  { %321 = vmatmul.mubr.f32.vlgmr.msra.gmra.mrb[0].mxu1 %v160_v58 }
 0x205   :  { %v231_v60 = vpop.f32.mrb[0].mxu1 }
 0x206   :  { %v232_v61 = vadd.f32 %v254_v59, %v231_v60  ;;  %v322_v62 = vpop.f32.mrb[1].mxu1 }
 0x208   :  { %235 = vst [vmem:[#allocation7] sm:$0xff] %v232_v61 }
 0x209   :  { %418 = shalt.err (!%p415_p6)
}
 0x20a   :  { %s419_s10 = scalar_lea.hbm %s516_s2, 128 }
 0x20b   :  { %p420_p7 = scmp.ne.s32.totalorder %s516_s2, %s419_s10  ;;  %p423_p8 = scmp.lt.u32.totalorder %s419_s10, %s516_s2 }
 0x20d   :  { %p425_p9 = pnand %p423_p8, %p420_p7 }
 0x20f   :  { %428 = shalt.err (!%p425_p9)
}
 0x210   :  { %245 = dma.vmem_to_hbm [thread:$0]  %s243_s6, 128, %s516_s2, [#allocation4]  }
 0x211   :  { %433 = dma.done.wait [#allocation4], 128  }
 0x212   :  { %434 = vsyncadd [#allocation4], 4294967168 }
 0x213   :  { %249 = vsyncpa [#allocation3], 1 }
 0x214   :  { %250 = vsyncpa [#allocation6], 1 }
 0x215   :  { %251 = vsyncpa [#allocation4], 1 }

</bundles_post_ra>
